<compile_context>
chip_gen: v7x
topology: tpu7x:2x2x1
jax: 0.10.0
libtpu: 0.0.40
codegen_flags: <defaults>
</compile_context>

<pallas_src>
import jax
import jax.numpy as jnp
from jax import lax
from jax.experimental import pallas as pl
from jax.experimental.pallas import tpu as pltpu


# ---------------------------------------------------------------------------
# Fused kernel: full GCN forward
# ---------------------------------------------------------------------------

def _gcn_fused_kernel(adj_ref, x_ref, w1_ref, w2_ref, w3_ref, wc_ref, bc_ref,
                      out_ref):
    adj = adj_ref[...]

    def gcn_layer(h, w_ref):
        # fc (no bias): h @ W^T via dot_general contracting on the `in` axis
        xw = lax.dot_general(h, w_ref[...], (((1,), (1,)), ((), ())),
                             preferred_element_type=jnp.float32)
        # graph propagation + relu
        return jnp.maximum(
            jnp.dot(adj, xw, preferred_element_type=jnp.float32), 0.0)

    h1 = gcn_layer(x_ref[...], w1_ref)
    h2 = gcn_layer(h1, w2_ref) + h1          # residual (dropout p=0 is identity)
    h3 = gcn_layer(h2, w3_ref) + h2          # residual

    # classifier: wc [1, hdim] . h3 [N, hdim] contracted on hdim -> (1, N)
    # lane-dense output slab (nodes on lane axis), bias added as SMEM scalar.
    logits = lax.dot_general(wc_ref[...], h3, (((1,), (1,)), ((), ())),
                             preferred_element_type=jnp.float32)
    logits = logits + bc_ref[0]
    out_ref[...] = logits.astype(out_ref.dtype)


# ---------------------------------------------------------------------------
# Wrappers
# ---------------------------------------------------------------------------

def gcn_forward(x, adj, w1, w2, w3, wc, bc):
    """Full GCN.forward as a single fused Pallas kernel. Returns logits [N]."""
    # TODO(synk): dropout for p_dropout > 0 not implemented (default p=0.0 is identity)
    n = x.shape[0]
    vmem = pl.BlockSpec(memory_space=pltpu.MemorySpace.VMEM)
    smem = pl.BlockSpec(memory_space=pltpu.MemorySpace.SMEM)
    out = pl.pallas_call(
        _gcn_fused_kernel,
        out_shape=jax.ShapeDtypeStruct((1, n), x.dtype),
        in_specs=[vmem, vmem, vmem, vmem, vmem, vmem, smem],
        out_specs=vmem,
    )(adj, x, w1, w2, w3, wc, bc)
    return out.reshape(n)


def normalize_adjacency(adjacency, add_self_loops=True):
    """GCN.get_normalized_adjacency_matrix (plain JAX glue, done once at setup)."""
    adj = adjacency
    if add_self_loops:
        adj = adj + jnp.eye(adj.shape[0], dtype=adj.dtype)
    degree = adj.sum(axis=1)
    d_inv_sqrt = 1.0 / jnp.sqrt(degree)
    # diag(d) @ adj @ diag(d) == d[:, None] * adj * d[None, :]
    return d_inv_sqrt[:, None] * adj * d_inv_sqrt[None, :]


# ---------------------------------------------------------------------------
# Reference (plain JAX) for a sanity check
# ---------------------------------------------------------------------------

def gcn_forward_ref(x, adj, w1, w2, w3, wc, bc):
    def layer(h, w, res=None):
        y = jnp.maximum(adj @ (h @ w.T), 0.0)
        return y if res is None else y + res
    h1 = layer(x, w1)
    h2 = layer(h1, w2, h1)
    h3 = layer(h2, w3, h2)
    return (h3 @ wc.T + bc).squeeze(-1)


# ---------------------------------------------------------------------------
# Main
# ---------------------------------------------------------------------------

if __name__ == "__main__":
    key = jax.random.PRNGKey(0)
    N, input_dim, hdim = 16, 32, 32
    ks = jax.random.split(key, 8)

    # symmetric binary adjacency (self-loops added during normalization)
    a = (jax.random.uniform(ks[0], (N, N)) < 0.3).astype(jnp.float32)
    a = jnp.triu(a, 1)
    adjacency = a + a.T
    adj = normalize_adjacency(adjacency)

    def linear_weight(k, out_d, in_d):
        bound = 1.0 / jnp.sqrt(jnp.float32(in_d))
        return jax.random.uniform(k, (out_d, in_d), jnp.float32, -bound, bound)

    w1 = linear_weight(ks[1], hdim, input_dim)   # gcn1.fc1.weight
    w2 = linear_weight(ks[2], hdim, hdim)        # gcn2.fc1.weight
    w3 = linear_weight(ks[3], hdim, hdim)        # gcn3.fc1.weight
    wc = linear_weight(ks[4], 1, hdim)           # classifier.weight
    bc = jax.random.uniform(ks[5], (1,), jnp.float32,
                            -1.0 / jnp.sqrt(jnp.float32(hdim)),
                            1.0 / jnp.sqrt(jnp.float32(hdim)))  # classifier.bias
    # (classifier2 exists in __init__ but is unused in forward)

    x = jax.random.normal(ks[6], (N, input_dim), jnp.float32)

    logits = jax.block_until_ready(gcn_forward(x, adj, w1, w2, w3, wc, bc))
    ref = gcn_forward_ref(x, adj, w1, w2, w3, wc, bc)

    assert logits.shape == (N,), logits.shape
    assert jnp.allclose(logits, ref, rtol=2e-2, atol=2e-2), (
        float(jnp.max(jnp.abs(logits - ref))))

    print("KERNEL_OK")
</pallas_src>

<mosaic_0001>
module attributes {stable_mosaic.version = 11 : i64} {
  func.func @_gcn_fused_kernel(%arg0: memref<16x16xf32, #tpu.memory_space<vmem>>, %arg1: memref<16x32xf32, #tpu.memory_space<vmem>>, %arg2: memref<32x32xf32, #tpu.memory_space<vmem>>, %arg3: memref<32x32xf32, #tpu.memory_space<vmem>>, %arg4: memref<32x32xf32, #tpu.memory_space<vmem>>, %arg5: memref<1x32xf32, #tpu.memory_space<vmem>>, %arg6: memref<1xf32, #tpu.memory_space<smem>>, %arg7: memref<1x16xf32, #tpu.memory_space<vmem>>) attributes {dimension_semantics = [], scalar_prefetch = 0 : i64, scratch_operands = 0 : i64, tpu.core_type = #tpu.core_type<tc>} {
    %c0 = arith.constant 0 : index
    %c0_0 = arith.constant 0 : index
    %0 = vector.load %arg0[%c0, %c0_0] : memref<16x16xf32, #tpu.memory_space<vmem>>, vector<16x16xf32>
    %c0_1 = arith.constant 0 : index
    %c0_2 = arith.constant 0 : index
    %1 = vector.load %arg1[%c0_1, %c0_2] : memref<16x32xf32, #tpu.memory_space<vmem>>, vector<16x32xf32>
    %c0_3 = arith.constant 0 : index
    %c0_4 = arith.constant 0 : index
    %2 = vector.load %arg2[%c0_3, %c0_4] : memref<32x32xf32, #tpu.memory_space<vmem>>, vector<32x32xf32>
    %cst = arith.constant dense<0.000000e+00> : vector<16x32xf32>
    %3 = tpu.matmul %1, %2, %cst {dimension_numbers = #tpu.dot_dimension_numbers<[1], [1], [0], [0], [0, 0, 1, 0], [], []>} : vector<16x32xf32>, vector<32x32xf32>, vector<16x32xf32> -> vector<16x32xf32>
    %cst_5 = arith.constant dense<0.000000e+00> : vector<16x32xf32>
    %4 = tpu.matmul %0, %3, %cst_5 {dimension_numbers = #tpu.dot_dimension_numbers<[1], [0], [0], [1], [0, 0, 1, 1], [], []>} : vector<16x16xf32>, vector<16x32xf32>, vector<16x32xf32> -> vector<16x32xf32>
    %cst_6 = arith.constant 0.000000e+00 : f32
    %5 = vector.broadcast %cst_6 : f32 to vector<16x32xf32>
    %6 = arith.maximumf %4, %5 : vector<16x32xf32>
    %c0_7 = arith.constant 0 : index
    %c0_8 = arith.constant 0 : index
    %7 = vector.load %arg3[%c0_7, %c0_8] : memref<32x32xf32, #tpu.memory_space<vmem>>, vector<32x32xf32>
    %cst_9 = arith.constant dense<0.000000e+00> : vector<16x32xf32>
    %8 = tpu.matmul %6, %7, %cst_9 {dimension_numbers = #tpu.dot_dimension_numbers<[1], [1], [0], [0], [0, 0, 1, 0], [], []>} : vector<16x32xf32>, vector<32x32xf32>, vector<16x32xf32> -> vector<16x32xf32>
    %cst_10 = arith.constant dense<0.000000e+00> : vector<16x32xf32>
    %9 = tpu.matmul %0, %8, %cst_10 {dimension_numbers = #tpu.dot_dimension_numbers<[1], [0], [0], [1], [0, 0, 1, 1], [], []>} : vector<16x16xf32>, vector<16x32xf32>, vector<16x32xf32> -> vector<16x32xf32>
    %cst_11 = arith.constant 0.000000e+00 : f32
    %10 = vector.broadcast %cst_11 : f32 to vector<16x32xf32>
    %11 = arith.maximumf %9, %10 : vector<16x32xf32>
    %12 = arith.addf %11, %6 : vector<16x32xf32>
    %c0_12 = arith.constant 0 : index
    %c0_13 = arith.constant 0 : index
    %13 = vector.load %arg4[%c0_12, %c0_13] : memref<32x32xf32, #tpu.memory_space<vmem>>, vector<32x32xf32>
    %cst_14 = arith.constant dense<0.000000e+00> : vector<16x32xf32>
    %14 = tpu.matmul %12, %13, %cst_14 {dimension_numbers = #tpu.dot_dimension_numbers<[1], [1], [0], [0], [0, 0, 1, 0], [], []>} : vector<16x32xf32>, vector<32x32xf32>, vector<16x32xf32> -> vector<16x32xf32>
    %cst_15 = arith.constant dense<0.000000e+00> : vector<16x32xf32>
    %15 = tpu.matmul %0, %14, %cst_15 {dimension_numbers = #tpu.dot_dimension_numbers<[1], [0], [0], [1], [0, 0, 1, 1], [], []>} : vector<16x16xf32>, vector<16x32xf32>, vector<16x32xf32> -> vector<16x32xf32>
    %cst_16 = arith.constant 0.000000e+00 : f32
    %16 = vector.broadcast %cst_16 : f32 to vector<16x32xf32>
    %17 = arith.maximumf %15, %16 : vector<16x32xf32>
    %18 = arith.addf %17, %12 : vector<16x32xf32>
    %c0_17 = arith.constant 0 : index
    %c0_18 = arith.constant 0 : index
    %19 = vector.load %arg5[%c0_17, %c0_18] : memref<1x32xf32, #tpu.memory_space<vmem>>, vector<1x32xf32>
    %cst_19 = arith.constant dense<0.000000e+00> : vector<1x16xf32>
    %20 = tpu.matmul %19, %18, %cst_19 {dimension_numbers = #tpu.dot_dimension_numbers<[1], [1], [0], [0], [0, 0, 1, 0], [], []>} : vector<1x32xf32>, vector<16x32xf32>, vector<1x16xf32> -> vector<1x16xf32>
    %c0_20 = arith.constant 0 : index
    %21 = memref.load %arg6[%c0_20] : memref<1xf32, #tpu.memory_space<smem>>
    %22 = vector.broadcast %21 : f32 to vector<1x16xf32>
    %23 = arith.addf %20, %22 : vector<1x16xf32>
    %c0_21 = arith.constant 0 : index
    %c0_22 = arith.constant 0 : index
    %24 = vector.load %arg7[%c0_21, %c0_22] : memref<1x16xf32, #tpu.memory_space<vmem>>, vector<1x16xf32>
    tpu.vector_store %arg7[%c0_21, %c0_22], %23 {strides = array<i32>} : memref<1x16xf32, #tpu.memory_space<vmem>>, vector<1x16xf32>,
    return
  }
}

</mosaic_0001>

<bundles_post_ra>
// kernel: tpu_custom_call.1
= control target key start
LH: loop header
LB: loop body
LE: loop exit
PB: predicated region body
PF: predicated region fallthrough
CT: control target
= control target key end

     0   :  { %13 = vsyncpa [#allocation4], 0  ;;  %s1262_s0 = inlined_call_operand.hbm [shape: f32[16,16], index: 0, kind: input, shape index: {}]   ;;  %s1263_s1 = inlined_call_operand.hbm [shape: f32[16,32], index: 1, kind: input, shape index: {}]   ;;  %s1264_s2 = inlined_call_operand.hbm [shape: f32[32,32], index: 2, kind: input, shape index: {}]   ;;  %s1265_s3 = inlined_call_operand.hbm [shape: f32[32,32], index: 3, kind: input, shape index: {}]   ;;  %s1266_s4 = inlined_call_operand.hbm [shape: f32[32,32], index: 4, kind: input, shape index: {}]   ;;  %s1267_s5 = inlined_call_operand.vmem [shape: f32[1,32], index: 5, kind: input, shape index: {}]   ;;  %s1268_s6 = inlined_call_operand.<no memory space> [shape: f32[1], index: 6, kind: input, shape index: {}]   ;;  %s1269_s7 = inlined_call_operand.hbm [shape: f32[1,16], index: 7, kind: output, shape index: {}]  }
   0x1   :  { %14 = vsyncpa [#allocation7], 0 }
   0x2   :  { %15 = vsyncpa [#allocation10], 0 }
   0x3   :  { %16 = vsyncpa [#allocation5], 0  ;;  %s1059_s24 = smov [#allocation6]   ;;  %s1060_s26 = smov [#allocation9]  }
   0x4   :  { %s34_s25 = sshll.u32 %s1059_s24, 4  ;;  %s58_s27 = sshll.u32 %s1060_s26, 4  ;;  %s35_s25 = int_to_ptr.vmem [resolvable:$true] %s34_s25  ;;  %s1110_s27 = int_to_ptr.vmem [resolvable:$true] %s58_s27 }
   0x5   :  { %s919_s30 = scalar_lea.hbm %s1263_s1, 256 }
   0x6   :  { %p920_p0 = scmp.ne.s32.totalorder %s1263_s1, %s919_s30  ;;  %p923_p1 = scmp.lt.u32.totalorder %s919_s30, %s1263_s1 }
   0x8   :  { %p925_p2 = pnand %p923_p1, %p920_p0 }
   0xa   :  { %928 = shalt.err (!%p925_p2)
}
   0xb   :  { %s929_s12 = scalar_lea.vmem %s35_s25, 256  ;;  %p934_p4 = scmp.lt.s32.totalorder %s35_s25, %s35_s25 }
   0xc   :  { %p930_p3 = scmp.ne.s32.totalorder %s35_s25, %s929_s12  ;;  %p935_p5 = scmp.lt.s32.totalorder %s929_s12, %s929_s12 }
   0xe   :  { %p936_p6 = por %p935_p5, %p934_p4 }
  0x10   :  { %p937_p7 = pnand %p936_p6, %p930_p3 }
  0x12   :  { %940 = shalt.err (!%p937_p7)
}
  0x13   :  { %s1061_s13 = smov 128   ;;  %s1062_s14 = smov 8  }
  0x14   :  { %40 = dma.hbm_to_vmem [thread:$0]  %s1263_s1, 256, %s35_s25, [#allocation7], %s1061_s13, %s1061_s13, %s1062_s14  }
  0x15   :  { %s941_s19 = scalar_lea.hbm %s1265_s3, 512 }
  0x16   :  { %p942_p8 = scmp.ne.s32.totalorder %s1265_s3, %s941_s19  ;;  %p945_p9 = scmp.lt.u32.totalorder %s941_s19, %s1265_s3 }
  0x18   :  { %p947_p10 = pnand %p945_p9, %p942_p8 }
  0x1a   :  { %950 = shalt.err (!%p947_p10)
}
  0x1b   :  { %s951_s24 = scalar_lea.vmem %s1110_s27, 512  ;;  %p956_p12 = scmp.lt.s32.totalorder %s1110_s27, %s1110_s27 }
  0x1c   :  { %p952_p11 = scmp.ne.s32.totalorder %s1110_s27, %s951_s24  ;;  %p957_p13 = scmp.lt.s32.totalorder %s951_s24, %s951_s24 }
  0x1e   :  { %p958_p0 = por %p957_p13, %p956_p12 }
  0x20   :  { %p959_p1 = pnand %p958_p0, %p952_p11 }
  0x22   :  { %962 = shalt.err (!%p959_p1)
}
  0x23   :  { %64 = dma.hbm_to_vmem [thread:$0]  %s1265_s3, 512, %s1110_s27, [#allocation10], %s1061_s13, %s1061_s13, %s1062_s14  }
  0x24   :  { %s1063_s26 = smov [#allocation3]   ;;  %s1064_s29 = smov [#allocation8]  }
  0x25   :  { %s22_s28 = sshll.u32 %s1063_s26, 4  ;;  %s46_s30 = sshll.u32 %s1064_s29, 4  ;;  %s23_s28 = int_to_ptr.vmem [resolvable:$true] %s22_s28  ;;  %s1147_s30 = int_to_ptr.vmem [resolvable:$true] %s46_s30 }
  0x26   :  { %s963_s10 = scalar_lea.hbm %s1262_s0, 256 }
  0x27   :  { %p964_p2 = scmp.ne.s32.totalorder %s1262_s0, %s963_s10  ;;  %p967_p3 = scmp.lt.u32.totalorder %s963_s10, %s1262_s0 }
  0x29   :  { %p969_p4 = pnand %p967_p3, %p964_p2 }
  0x2b   :  { %972 = shalt.err (!%p969_p4)
}
  0x2c   :  { %s973_s3 = scalar_lea.vmem %s23_s28, 256  ;;  %p978_p6 = scmp.lt.s32.totalorder %s23_s28, %s23_s28 }
  0x2d   :  { %p974_p5 = scmp.ne.s32.totalorder %s23_s28, %s973_s3  ;;  %p979_p7 = scmp.lt.s32.totalorder %s973_s3, %s973_s3 }
  0x2f   :  { %p980_p8 = por %p979_p7, %p978_p6 }
  0x31   :  { %p981_p9 = pnand %p980_p8, %p974_p5 }
  0x33   :  { %984 = shalt.err (!%p981_p9)
}
  0x34   :  { %28 = dma.hbm_to_vmem [thread:$0]  %s1262_s0, 256, %s23_s28, [#allocation4], %s1061_s13, %s1061_s13, %s1062_s14  }
  0x35   :  { %s985_s20 = scalar_lea.hbm %s1264_s2, 512 }
  0x36   :  { %p986_p10 = scmp.ne.s32.totalorder %s1264_s2, %s985_s20  ;;  %p989_p11 = scmp.lt.u32.totalorder %s985_s20, %s1264_s2 }
  0x38   :  { %p991_p12 = pnand %p989_p11, %p986_p10 }
  0x3a   :  { %994 = shalt.err (!%p991_p12)
}
  0x3b   :  { %s995_s1 = scalar_lea.vmem %s1147_s30, 512  ;;  %p1000_p0 = scmp.lt.s32.totalorder %s1147_s30, %s1147_s30 }
  0x3c   :  { %p996_p13 = scmp.ne.s32.totalorder %s1147_s30, %s995_s1  ;;  %p1001_p1 = scmp.lt.s32.totalorder %s995_s1, %s995_s1 }
  0x3e   :  { %p1002_p2 = por %p1001_p1, %p1000_p0 }
  0x40   :  { %p1003_p3 = pnand %p1002_p2, %p996_p13 }
  0x42   :  { %1006 = shalt.err (!%p1003_p3)
}
  0x43   :  { %52 = dma.hbm_to_vmem [thread:$0]  %s1264_s2, 512, %s1147_s30, [#allocation7], %s1061_s13, %s1061_s13, %s1062_s14  }
  0x44   :  { %s1065_s26 = smov [#allocation11]   ;;  %s1007_s9 = scalar_lea.hbm %s1266_s4, 512 }
  0x45   :  { %s70_s28 = sshll.u32 %s1065_s26, 4  ;;  %p1008_p4 = scmp.ne.s32.totalorder %s1266_s4, %s1007_s9  ;;  %s71_s28 = int_to_ptr.vmem [resolvable:$true] %s70_s28 }
  0x46   :  { %p1011_p5 = scmp.lt.u32.totalorder %s1007_s9, %s1266_s4 }
  0x48   :  { %p1013_p6 = pnand %p1011_p5, %p1008_p4 }
  0x4a   :  { %1016 = shalt.err (!%p1013_p6)
}
  0x4b   :  { %s1017_s16 = scalar_lea.vmem %s71_s28, 512  ;;  %p1022_p8 = scmp.lt.s32.totalorder %s71_s28, %s71_s28 }
  0x4c   :  { %p1018_p7 = scmp.ne.s32.totalorder %s71_s28, %s1017_s16  ;;  %p1023_p9 = scmp.lt.s32.totalorder %s1017_s16, %s1017_s16 }
  0x4e   :  { %p1024_p10 = por %p1023_p9, %p1022_p8 }
  0x50   :  { %p1025_p11 = pnand %p1024_p10, %p1018_p7 }
  0x52   :  { %1028 = shalt.err (!%p1025_p11)
}
  0x53   :  { %76 = dma.hbm_to_vmem [thread:$0]  %s1266_s4, 512, %s71_s28, [#allocation10], %s1061_s13, %s1061_s13, %s1062_s14  }
  0x54   :  { %1051 = dma.done.wait [#allocation4], 256  }
  0x55   :  { %1052 = vsyncadd [#allocation4], 4294967040 }
  0x56   :  { %1053 = dma.done.wait [#allocation7], 768  }
  0x57   :  { %1054 = vsyncadd [#allocation7], 4294966528 }
  0x58   :  { %1055 = dma.done.wait [#allocation10], 1024  }
  0x59   :  { %1056 = vsyncadd [#allocation10], 4294966272  ;;  %vm104_vm0 = vcmask 261120   ;;  %v100_v1 = vld [vmem:[#allocation8] sm:$0xff]  ;;  %v101_v2 = vld [vmem:[#allocation8 + $0x8] sm:$0xff]  ;;  %vm198_vm2 = vcmask 130048   ;;  %v636_v52 = vstv %s1268_s6 }
  0x5a   :  { %vm1201_vm1 = vmpackc.low %vm104_vm0, %vm104_vm0  ;;  %v102_v3 = vld [vmem:[#allocation8 + $0x10] sm:$0xff]  ;;  %v856_v4 = vpack.c.bf16 %v101_v2, %v100_v1  ;;  %v103_v5 = vld [vmem:[#allocation8 + $0x18] sm:$0xff]  ;;  %v1066_v42 = vmov 0.0|0.0   ;;  %vm1067_vm3 = vmmov 0   ;;  %v1068_v43 = vmov 0.0   ;;  %s1069_s27 = smov [#allocation12]  }
  0x5b   :  { %v98_v6 = vld [vmem:[#allocation6] sm:$0xff]  ;;  %v862_v7 = vpack.c.bf16 %v103_v5, %v102_v3  ;;  %v99_v8 = vld [vmem:[#allocation6 + $0x8] sm:$0xff]  ;;  %v96_v9 = vld [vmem:[#allocation3] sm:$0xff]  ;;  %s724_s17 = sshll.u32 %s1069_s27, 4  ;;  %vm716_vm4 = vcmask 122880   ;;  %s725_s17 = int_to_ptr.vmem [resolvable:$true] %s724_s17 }
  0x5c   :  { %803 = vmatprep.mubr.msk.f32.mxu0 %vm104_vm0, %v98_v6  ;;  %858 = vmatprep.subr.msk.bf16.mxu0 %vm1201_vm1, %v856_v4  ;;  %v282_v10 = vld [vmem:[#allocation9] sm:$0xff]  ;;  %v283_v11 = vld [vmem:[#allocation9 + $0x8] sm:$0xff]  ;;  %v284_v17 = vld [vmem:[#allocation9 + $0x10] sm:$0xff]  ;;  %s1029_s18 = scalar_lea.vmem %s725_s17, 16  ;;  %s1033_s19 = scalar_lea.vmem %s725_s17, 32 }
  0x5d   :  { %861 = vmatpush3.bf16.xpose.msk.msra.mxu0 %vm1201_vm1, %v856_v4  ;;  %810 = vmatprep.mubr.msk.f32.mxu1 %vm198_vm2, %v96_v9  ;;  %v872_v15 = vpack.c.bf16 %v283_v11, %v282_v10  ;;  %v97_v16 = vld [vmem:[#allocation3 + $0x8] sm:$0xff]  ;;  %v285_v18 = vld [vmem:[#allocation9 + $0x18] sm:$0xff]  ;;  %v458_v24 = vld [vmem:[#allocation11] sm:$0xff]  ;;  %p1030_p12 = scmp.ne.s32.totalorder %s725_s17, %s1029_s18  ;;  %p1034_p13 = scmp.lt.s32.totalorder %s725_s17, %s725_s17 }
  0x5e   :  { %864 = vmatprep.subr.msk.bf16.mxu0 %vm1201_vm1, %v862_v7  ;;  %v878_v19 = vpack.c.bf16 %v285_v18, %v284_v17  ;;  %v459_v25 = vld [vmem:[#allocation11 + $0x8] sm:$0xff]  ;;  %v460_v30 = vld [vmem:[#allocation11 + $0x10] sm:$0xff]  ;;  %v461_v31 = vld [vmem:[#allocation11 + $0x18] sm:$0xff]  ;;  %p1035_p0 = scmp.lt.s32.totalorder %s1033_s19, %s1029_s18 }
  0x5f   :  { %v888_v29 = vpack.c.bf16 %v459_v25, %v458_v24  ;;  %v894_v32 = vpack.c.bf16 %v461_v31, %v460_v30  ;;  %v634_v51 = vld [vmem:[%s1267_s5] sm:$0x1] }
  0x60   :  { %p1036_p1 = por %p1035_p0, %p1034_p13 }
  0x62   :  { %p1037_p2 = pnand %p1036_p1, %p1030_p12 }
  0x65   :  { %867 = vmatpush3.bf16.xpose.msk.msra.mxu0 %vm1201_vm1, %v862_v7 }
  0x6c   :  { %804 = vmatmul.mubr.msk.f32.vlgmr.msra.gmra.mrb[0].mxu0 %vm104_vm0, %v99_v8 }
  0x6d   :  { %828 = vmatprep.mubr.msk.f32.mxu0 %vm198_vm2, %v96_v9 }
 0x13f   :  { %v805_v12 = vpop.f32.mrb[0].mxu0 }
 0x140   :  { %v189_v13 = vpop.f32.mrb[1].mxu0 }
 0x141   :  { %v868_v14 = vpack.c.bf16 %v805_v12, %v189_v13 }
 0x143   :  { %869 = vmatprep.subr.bf16.mxu1 %v868_v14 }
 0x144   :  { %871 = vmatpush3.bf16.msra.mxu1 %v868_v14 }
 0x145   :  { %874 = vmatprep.subr.msk.bf16.mxu1 %vm1201_vm1, %v872_v15 }
 0x147   :  { %811 = vmatmul.mubr.msk.f32.vlgmr.msra.gmra.mrb[0].mxu1 %vm198_vm2, %v97_v16 }
 0x14d   :  { %877 = vmatpush3.bf16.xpose.msk.msra.mxu1 %vm1201_vm1, %v872_v15 }
 0x14e   :  { %880 = vmatprep.subr.msk.bf16.mxu1 %vm1201_vm1, %v878_v19 }
 0x155   :  { %883 = vmatpush3.bf16.xpose.msk.msra.mxu1 %vm1201_vm1, %v878_v19 }
 0x21a   :  { %v812_v20 = vpop.f32.mrb[0].mxu1 }
 0x21b   :  { %v271_v21 = vpop.f32.mrb[1].mxu1  ;;  %v281_v23 = vmax.f32 %v812_v20, 0.0 }
 0x21c   :  { %v280_v22 = vmax.f32 %v271_v21, 0.0 }
 0x21e   :  { %821 = vmatprep.mubr.msk.f32.mxu1 %vm104_vm0, %v280_v22 }
 0x21f   :  { %822 = vmatmul.mubr.msk.f32.vlgmr.msra.gmra.mrb[2].mxu1 %vm104_vm0, %v281_v23 }
 0x220   :  { %846 = vmatprep.mubr.msk.f32.mxu1 %vm198_vm2, %v96_v9 }
 0x2f2   :  { %v823_v26 = vpop.f32.mrb[2].mxu1 }
 0x2f3   :  { %v370_v27 = vpop.f32.mrb[3].mxu1 }
 0x2f4   :  { %v884_v28 = vpack.c.bf16 %v823_v26, %v370_v27 }
 0x2f6   :  { %885 = vmatprep.subr.bf16.mxu0 %v884_v28 }
 0x2f7   :  { %887 = vmatpush3.bf16.msra.mxu0 %v884_v28 }
 0x2f8   :  { %890 = vmatprep.subr.msk.bf16.mxu0 %vm1201_vm1, %v888_v29 }
 0x2fa   :  { %829 = vmatmul.mubr.msk.f32.vlgmr.msra.gmra.mrb[2].mxu0 %vm198_vm2, %v97_v16 }
 0x300   :  { %893 = vmatpush3.bf16.xpose.msk.msra.mxu0 %vm1201_vm1, %v888_v29 }
 0x301   :  { %896 = vmatprep.subr.msk.bf16.mxu0 %vm1201_vm1, %v894_v32 }
 0x308   :  { %899 = vmatpush3.bf16.xpose.msk.msra.mxu0 %vm1201_vm1, %v894_v32 }
 0x3cd   :  { %v830_v33 = vpop.f32.mrb[2].mxu0 }
 0x3ce   :  { %v455_v34 = vmax.f32 %v830_v33, 0.0  ;;  %v445_v35 = vpop.f32.mrb[3].mxu0 }
 0x3cf   :  { %v454_v36 = vmax.f32 %v445_v35, 0.0 }
 0x3d0   :  { %v457_v38 = vadd.f32 %v455_v34, %v281_v23 }
 0x3d1   :  { %v456_v37 = vadd.f32 %v454_v36, %v280_v22 }
 0x3d3   :  { %839 = vmatprep.mubr.msk.f32.mxu0 %vm104_vm0, %v456_v37 }
 0x3d4   :  { %840 = vmatmul.mubr.msk.f32.vlgmr.msra.gmra.mrb[4].mxu0 %vm104_vm0, %v457_v38 }
 0x4a7   :  { %v841_v39 = vpop.f32.mrb[4].mxu0 }
 0x4a8   :  { %v546_v40 = vpop.f32.mrb[5].mxu0 }
 0x4a9   :  { %v900_v41 = vpack.c.bf16 %v841_v39, %v546_v40 }
 0x4ab   :  { %901 = vmatprep.subr.bf16.mxu1 %v900_v41 }
 0x4ac   :  { %903 = vmatpush3.bf16.msra.mxu1 %v900_v41 }
 0x4ad   :  { %904 = vmatprep.subr.bf16.mxu1 %v1066_v42 }
 0x4af   :  { %847 = vmatmul.mubr.msk.f32.vlgmr.msra.gmra.mrb[4].mxu1 %vm198_vm2, %v97_v16 }
 0x4b0   :  { %853 = vmatprep.mubr.msk.f32.mxu1 %vm1067_vm3, %v1068_v43 }
 0x582   :  { %v848_v44 = vpop.f32.mrb[4].mxu1 }
 0x583   :  { %v631_v45 = vmax.f32 %v848_v44, 0.0  ;;  %v621_v46 = vpop.f32.mrb[5].mxu1 }
 0x584   :  { %v630_v47 = vmax.f32 %v621_v46, 0.0 }
 0x585   :  { %v633_v48 = vadd.f32 %v631_v45, %v457_v38 }
 0x586   :  { %v632_v49 = vadd.f32 %v630_v47, %v456_v37 }
 0x588   :  { %v905_v50 = vpack.c.bf16 %v633_v48, %v632_v49 }
 0x58a   :  { %907 = vmatpush3.bf16.xpose.msk.msra.mxu1 %vm1201_vm1, %v905_v50 }
 0x591   :  { %854 = vmatmul.mubr.msk.f32.vlgmr.msra.gmra.mrb[6].mxu1 %vm104_vm0, %v634_v51 }
 0x664   :  { %v712_v53 = vpop.f32.mrb[6].mxu1 }
 0x665   :  { %v713_v54 = vadd.f32 %v712_v53, %v636_v52  ;;  %v855_v55 = vpop.f32.mrb[7].mxu1 }
 0x667   :  { %717 = vst.msk [vmem:[#allocation12] sm:$0x1] %vm716_vm4, %v713_v54 }
 0x668   :  { %1040 = shalt.err (!%p1037_p2)
}
 0x669   :  { %s1041_s6 = scalar_lea.hbm %s1269_s7, 16 }
 0x66a   :  { %p1042_p3 = scmp.ne.s32.totalorder %s1269_s7, %s1041_s6  ;;  %p1045_p4 = scmp.lt.u32.totalorder %s1041_s6, %s1269_s7 }
 0x66c   :  { %p1047_p5 = pnand %p1045_p4, %p1042_p3 }
 0x66e   :  { %1050 = shalt.err (!%p1047_p5)
}
 0x66f   :  { %727 = dma.vmem_to_hbm [thread:$0]  %s725_s17, 16, %s1269_s7, [#allocation5]  }
 0x670   :  { %1057 = dma.done.wait [#allocation5], 16  }
 0x671   :  { %1058 = vsyncadd [#allocation5], 4294967280 }
 0x672   :  { %731 = vsyncpa [#allocation4], 1 }
 0x673   :  { %732 = vsyncpa [#allocation7], 1 }
 0x674   :  { %733 = vsyncpa [#allocation10], 1 }
 0x675   :  { %734 = vsyncpa [#allocation5], 1 }

</bundles_post_ra>
